<compile_context>
chip_gen: v5e
topology: v5e:2x2
jax: 0.10.0
libtpu: 0.0.40
codegen_flags: <defaults>
</compile_context>

<pallas_src>
import math
import functools

import jax
import jax.numpy as jnp
from jax.experimental import pallas as pl
from jax.experimental.pallas import tpu as pltpu


# ----------------------------- in-kernel helpers -----------------------------

def _erf(x):
    # Abramowitz & Stegun 7.1.26 polynomial (max abs err ~1.5e-7) for exact-erf GELU.
    p = 0.3275911
    a1, a2, a3, a4, a5 = 0.254829592, -0.284496736, 1.421413741, -1.453152027, 1.061405429
    s = jnp.where(x >= 0.0, 1.0, -1.0)
    ax = jnp.abs(x)
    t = 1.0 / (1.0 + p * ax)
    poly = ((((a5 * t + a4) * t + a3) * t + a2) * t + a1) * t
    return s * (1.0 - poly * jnp.exp(-ax * ax))


def _gelu_exact(x):
    return 0.5 * x * (1.0 + _erf(x * 0.7071067811865476))


def _silu(x):
    return x * jax.nn.sigmoid(x)


def _softplus(x):
    # matches F.softplus (threshold=20)
    return jnp.where(x > 20.0, x, jnp.log(1.0 + jnp.exp(jnp.minimum(x, 20.0))))


# ------------------------------- fused Pallas kernel -------------------------------

def fused_block_kernel(x_ref, wi_ref, wx_ref, wdt_ref, wo_ref, w1_ref, w2_ref,
                       prm_ref, out_ref, *, B, L, D, DI, R, N, eps):
    f32 = jnp.float32
    bf16 = jnp.bfloat16

    # Packed small params: one row each, zero-padded to 128 lanes.
    P = prm_ref
    rms_w  = P[0:1, :D]
    bi     = P[1:2, :2 * DI]
    conv_w = P[2:3, :DI]          # last conv tap per channel
    conv_b = P[3:4, :DI]
    bdt    = P[4:5, :DI]
    Dp     = P[5:6, :DI]
    bo     = P[6:7, :D]
    ln_w   = P[7:8, :D]
    ln_b   = P[8:9, :D]
    b1     = P[9:10, :w1_ref.shape[1]]
    b2     = P[10:11, :D]

    x = x_ref[...]                                             # (B*L, D) f32

    # ---- RMSNorm (eps = 1e-5) ----
    ms = jnp.mean(x * x, axis=-1, keepdims=True)
    xn = x * jax.lax.rsqrt(ms + 1e-5) * rms_w                  # (B*L, D)

    # ---- in_proj: single 128-lane-wide dot, then split conv-path / gate-path ----
    h_in = jnp.dot(xn.astype(bf16), wi_ref[...],
                   preferred_element_type=f32) + bi            # (B*L, 2*DI)
    xp  = h_in[:, :DI]                                         # conv path
    res = h_in[:, DI:]                                         # gate path

    # ---- depthwise causal conv, only t=0 kept -> last tap * x[:,0,:] + bias ----
    xp0 = jnp.concatenate([xp[b * L:b * L + 1, :] for b in range(B)], axis=0)  # (B, DI)
    c0 = xp0 * conv_w + conv_b
    u = _silu(c0)                                              # (B, DI)

    # ---- x_proj (fused dt|B|C) + dt_proj + single-step selective scan ----
    xdbl = jnp.dot(u.astype(bf16), wx_ref[...],
                   preferred_element_type=f32)                 # (B, R + 2N)
    dt_r = xdbl[:, :R]
    Bm = xdbl[:, R:R + N]
    Cm = xdbl[:, R + N:]
    delta = _softplus(jnp.dot(dt_r.astype(bf16), wdt_ref[...],
                              preferred_element_type=f32) + bdt)   # (B, DI)
    # zero initial state + single timestep:  y = u * (delta * sum_n(B*C) + D)
    bc = jnp.sum(Bm * Cm, axis=-1, keepdims=True)              # (B, 1)
    y = u * (delta * bc + Dp)                                  # (B, DI)

    # ---- gate with silu(res) (broadcast y over L), out_proj, residual ----
    res_g = _silu(res)                                         # (B*L, DI)
    yg = jnp.concatenate(
        [res_g[b * L:(b + 1) * L, :] * y[b:b + 1, :] for b in range(B)],
        axis=0)                                                # (B*L, DI)
    mo = jnp.dot(yg.astype(bf16), wo_ref[...],
                 preferred_element_type=f32) + bo              # (B*L, D)
    x1 = x + mo

    # ---- LayerNorm + MLP (GELU exact) + residual ----
    mu = jnp.mean(x1, axis=-1, keepdims=True)
    var = jnp.mean((x1 - mu) * (x1 - mu), axis=-1, keepdims=True)
    ln = (x1 - mu) * jax.lax.rsqrt(var + eps) * ln_w + ln_b
    h = _gelu_exact(jnp.dot(ln.astype(bf16), w1_ref[...],
                            preferred_element_type=f32) + b1)  # (B*L, INNER)
    o = jnp.dot(h.astype(bf16), w2_ref[...],
                preferred_element_type=f32) + b2               # (B*L, D)
    # TODO(synk): Dropout(drop_p) is identity in eval mode; training-mode dropout omitted.
    out_ref[...] = x1 + o


# --------------------------------- wrapper ------------------------------------

def block_forward(x, p, *, ln_eps=1e-5):
    B, L, D = x.shape
    DI = p["wo"].shape[0]
    R = p["wdt"].shape[0]
    N = (p["wx"].shape[1] - R) // 2

    bf16 = jnp.bfloat16
    xf = x.reshape(B * L, D)
    operands = (
        xf,
        p["wi"].astype(bf16), p["wx"].astype(bf16), p["wdt"].astype(bf16),
        p["wo"].astype(bf16), p["w1"].astype(bf16), p["w2"].astype(bf16),
        p["packed"],
    )
    vmem = pl.BlockSpec(memory_space=pltpu.MemorySpace.VMEM)

    out = pl.pallas_call(
        functools.partial(fused_block_kernel,
                          B=B, L=L, D=D, DI=DI, R=R, N=N, eps=ln_eps),
        out_shape=jax.ShapeDtypeStruct((B * L, D), jnp.float32),
        in_specs=[vmem] * len(operands),
        out_specs=vmem,
    )(*operands)
    return out.reshape(B, L, D)


# ------------------------------ params / reference -----------------------------

def init_params(key, D):
    DI = 2 * D                      # d_inner
    R = max(1, math.ceil(D / 16))   # dt_rank
    N = 16                          # d_state
    K = 4                           # d_conv
    INNER = 4 * D                   # mlp inner dim
    ks = jax.random.split(key, 13)

    def uinit(k, fan_in, shape):
        b = 1.0 / math.sqrt(fan_in)
        return jax.random.uniform(k, shape, jnp.float32, -b, b)

    Wi = uinit(ks[0], D, (2 * DI, D)); bi = uinit(ks[1], D, (2 * DI,))
    Wc = uinit(ks[2], K, (DI, 1, K)); bc = uinit(ks[3], K, (DI,))
    Wx = uinit(ks[4], DI, (R + 2 * N, DI))
    dt_std = R ** -0.5
    Wdt = jax.random.uniform(ks[5], (DI, R), jnp.float32, -dt_std, dt_std)
    dt = jnp.exp(jax.random.uniform(ks[6], (DI,), jnp.float32)
                 * (math.log(0.1) - math.log(0.001)) + math.log(0.001))
    dt = jnp.maximum(dt, 1e-4)
    bdt = dt + jnp.log(-jnp.expm1(-dt))
    Wo = uinit(ks[7], DI, (D, DI)); bo = uinit(ks[8], DI, (D,))
    W1 = uinit(ks[9], D, (INNER, D)); b1 = uinit(ks[10], D, (INNER,))
    W2 = uinit(ks[11], INNER, (D, INNER)); b2 = uinit(ks[12], INNER, (D,))

    width = 128 * pl.cdiv(max(D, 2 * DI, DI, INNER), 128)

    def row(v):
        v = jnp.asarray(v, jnp.float32).reshape(-1)
        return jnp.pad(v, (0, width - v.shape[0]))

    packed = jnp.stack([
        row(jnp.ones((D,), jnp.float32)),    # 0: RMSNorm weight
        row(bi),                             # 1: in_proj bias (2*DI)
        row(Wc[:, 0, K - 1]),                # 2: conv last tap
        row(bc),                             # 3: conv bias
        row(bdt),                            # 4: dt_proj bias
        row(jnp.ones((DI,), jnp.float32)),   # 5: D parameter
        row(bo),                             # 6: out_proj bias
        row(jnp.ones((D,), jnp.float32)),    # 7: LayerNorm weight
        row(jnp.zeros((D,), jnp.float32)),   # 8: LayerNorm bias
        row(b1),                             # 9: mlp fc1 bias (INNER)
        row(b2),                             # 10: mlp fc2 bias
    ])

    # A_log = log(arange(1..N)) broadcast to (DI, N) has no effect on this forward
    # (zero initial state, single retained timestep) and is intentionally omitted.
    return dict(
        wi=Wi.T,        # (D, 2*DI): cols [:DI] conv path, [DI:] gate path
        wx=Wx.T,        # (DI, R+2N): cols [dt | B | C]
        wdt=Wdt.T,      # (R, DI)
        wo=Wo.T,        # (DI, D)
        w1=W1.T,        # (D, INNER)
        w2=W2.T,        # (INNER, D)
        packed=packed,  # (11, 128) f32 small params
    )


def reference(x, p, ln_eps=1e-5):
    D = x.shape[-1]
    DI = p["wo"].shape[0]
    R = p["wdt"].shape[0]
    N = (p["wx"].shape[1] - R) // 2
    INNER = p["w1"].shape[1]
    prm = p["packed"]
    rms_w = prm[0, :D]; bi = prm[1, :2 * DI]
    conv_w = prm[2, :DI]; conv_b = prm[3, :DI]
    bdt = prm[4, :DI]; Dp = prm[5, :DI]; bo = prm[6, :D]
    ln_w = prm[7, :D]; ln_b = prm[8, :D]; b1 = prm[9, :INNER]; b2 = prm[10, :D]

    xn = x * jax.lax.rsqrt(jnp.mean(x * x, -1, keepdims=True) + 1e-5) * rms_w
    h = xn @ p["wi"] + bi
    xp, res = h[..., :DI], h[..., DI:]
    c0 = xp[:, 0, :] * conv_w + conv_b
    u = c0 * jax.nn.sigmoid(c0)
    xdbl = u @ p["wx"]
    dt_r, Bm, Cm = xdbl[:, :R], xdbl[:, R:R + N], xdbl[:, R + N:]
    delta = jax.nn.softplus(dt_r @ p["wdt"] + bdt)
    y = u * (delta * jnp.sum(Bm * Cm, -1, keepdims=True) + Dp)
    yg = y[:, None, :] * (res * jax.nn.sigmoid(res))
    x1 = x + yg @ p["wo"] + bo
    mu = jnp.mean(x1, -1, keepdims=True)
    var = jnp.mean((x1 - mu) ** 2, -1, keepdims=True)
    ln = (x1 - mu) * jax.lax.rsqrt(var + ln_eps) * ln_w + ln_b
    hm = jax.nn.gelu(ln @ p["w1"] + b1, approximate=False)
    return x1 + hm @ p["w2"] + b2


# ----------------------------------- main --------------------------------------

if __name__ == "__main__":
    B, L, D = 2, 8, 32            # batch, seq, n_embd (d_inner=64, dt_rank=2, d_state=16)
    key = jax.random.PRNGKey(0)
    kx, kp = jax.random.split(key)
    x = jax.random.normal(kx, (B, L, D), jnp.float32)
    params = init_params(kp, D)

    out = block_forward(x, params, ln_eps=1e-5)
    out = jax.block_until_ready(out)

    ref = reference(x, params, ln_eps=1e-5)
    assert out.shape == (B, L, D)
    max_err = float(jnp.max(jnp.abs(out - ref)))
    # bf16 MXU inputs with f32 accumulation -> slightly relaxed tolerance vs f32 reference.
    assert bool(jnp.allclose(out, ref, atol=2e-2, rtol=2e-2)), \
        f"mismatch vs JAX reference (max abs err {max_err})"
    print("KERNEL_OK")
</pallas_src>

<mosaic_0001>
module attributes {stable_mosaic.version = 11 : i64} {
  func.func @fused_block_kernel(%arg0: memref<16x32xf32, #tpu.memory_space<vmem>>, %arg1: memref<32x128xbf16, #tpu.memory_space<vmem>>, %arg2: memref<64x34xbf16, #tpu.memory_space<vmem>>, %arg3: memref<2x64xbf16, #tpu.memory_space<vmem>>, %arg4: memref<64x32xbf16, #tpu.memory_space<vmem>>, %arg5: memref<32x128xbf16, #tpu.memory_space<vmem>>, %arg6: memref<128x32xbf16, #tpu.memory_space<vmem>>, %arg7: memref<11x128xf32, #tpu.memory_space<vmem>>, %arg8: memref<16x32xf32, #tpu.memory_space<vmem>>) attributes {dimension_semantics = [], scalar_prefetch = 0 : i64, scratch_operands = 0 : i64, tpu.core_type = #tpu.core_type<tc>} {
    %c0 = arith.constant 0 : index
    %c0_0 = arith.constant 0 : index
    %0 = vector.load %arg7[%c0, %c0_0] : memref<11x128xf32, #tpu.memory_space<vmem>>, vector<1x32xf32>
    %c1 = arith.constant 1 : index
    %c0_1 = arith.constant 0 : index
    %1 = vector.load %arg7[%c1, %c0_1] : memref<11x128xf32, #tpu.memory_space<vmem>>, vector<1x128xf32>
    %c2 = arith.constant 2 : index
    %c0_2 = arith.constant 0 : index
    %2 = vector.load %arg7[%c2, %c0_2] : memref<11x128xf32, #tpu.memory_space<vmem>>, vector<1x64xf32>
    %c3 = arith.constant 3 : index
    %c0_3 = arith.constant 0 : index
    %3 = vector.load %arg7[%c3, %c0_3] : memref<11x128xf32, #tpu.memory_space<vmem>>, vector<1x64xf32>
    %c4 = arith.constant 4 : index
    %c0_4 = arith.constant 0 : index
    %4 = vector.load %arg7[%c4, %c0_4] : memref<11x128xf32, #tpu.memory_space<vmem>>, vector<1x64xf32>
    %c5 = arith.constant 5 : index
    %c0_5 = arith.constant 0 : index
    %5 = vector.load %arg7[%c5, %c0_5] : memref<11x128xf32, #tpu.memory_space<vmem>>, vector<1x64xf32>
    %c6 = arith.constant 6 : index
    %c0_6 = arith.constant 0 : index
    %6 = vector.load %arg7[%c6, %c0_6] : memref<11x128xf32, #tpu.memory_space<vmem>>, vector<1x32xf32>
    %c7 = arith.constant 7 : index
    %c0_7 = arith.constant 0 : index
    %7 = vector.load %arg7[%c7, %c0_7] : memref<11x128xf32, #tpu.memory_space<vmem>>, vector<1x32xf32>
    %c8 = arith.constant 8 : index
    %c0_8 = arith.constant 0 : index
    %8 = vector.load %arg7[%c8, %c0_8] : memref<11x128xf32, #tpu.memory_space<vmem>>, vector<1x32xf32>
    %c9 = arith.constant 9 : index
    %c0_9 = arith.constant 0 : index
    %9 = vector.load %arg7[%c9, %c0_9] : memref<11x128xf32, #tpu.memory_space<vmem>>, vector<1x128xf32>
    %c10 = arith.constant 10 : index
    %c0_10 = arith.constant 0 : index
    %10 = vector.load %arg7[%c10, %c0_10] : memref<11x128xf32, #tpu.memory_space<vmem>>, vector<1x32xf32>
    %c0_11 = arith.constant 0 : index
    %c0_12 = arith.constant 0 : index
    %11 = vector.load %arg0[%c0_11, %c0_12] : memref<16x32xf32, #tpu.memory_space<vmem>>, vector<16x32xf32>
    %12 = arith.mulf %11, %11 : vector<16x32xf32>
    %cst = arith.constant dense<0.000000e+00> : vector<16xf32>
    %13 = vector.multi_reduction <add>, %12, %cst [1] : vector<16x32xf32> to vector<16xf32>
    %14 = vector.shape_cast %13 : vector<16xf32> to vector<16x1xf32>
    %cst_13 = arith.constant 3.200000e+01 : f32
    %15 = vector.broadcast %cst_13 : f32 to vector<16x1xf32>
    %16 = arith.divf %14, %15 : vector<16x1xf32>
    %cst_14 = arith.constant 9.99999974E-6 : f32
    %17 = vector.broadcast %cst_14 : f32 to vector<16x1xf32>
    %18 = arith.addf %16, %17 : vector<16x1xf32>
    %19 = math.rsqrt %18 : vector<16x1xf32>
    %20 = vector.broadcast %19 : vector<16x1xf32> to vector<16x32xf32>
    %21 = arith.mulf %11, %20 : vector<16x32xf32>
    %22 = vector.broadcast %0 : vector<1x32xf32> to vector<16x32xf32>
    %23 = arith.mulf %21, %22 : vector<16x32xf32>
    %24 = arith.truncf %23 : vector<16x32xf32> to vector<16x32xbf16>
    %c0_15 = arith.constant 0 : index
    %c0_16 = arith.constant 0 : index
    %25 = vector.load %arg1[%c0_15, %c0_16] : memref<32x128xbf16, #tpu.memory_space<vmem>>, vector<32x128xbf16>
    %cst_17 = arith.constant dense<0.000000e+00> : vector<16x128xf32>
    %26 = tpu.matmul %24, %25, %cst_17 {dimension_numbers = #tpu.dot_dimension_numbers<[1], [0], [0], [1], [0, 0, 1, 1], [], []>} : vector<16x32xbf16>, vector<32x128xbf16>, vector<16x128xf32> -> vector<16x128xf32>
    %27 = vector.broadcast %1 : vector<1x128xf32> to vector<16x128xf32>
    %28 = arith.addf %26, %27 : vector<16x128xf32>
    %29 = vector.extract_strided_slice %28 {offsets = [0, 0], sizes = [16, 64], strides = [1, 1]} : vector<16x128xf32> to vector<16x64xf32>
    %30 = vector.extract_strided_slice %28 {offsets = [0, 64], sizes = [16, 64], strides = [1, 1]} : vector<16x128xf32> to vector<16x64xf32>
    %31 = vector.extract_strided_slice %29 {offsets = [0, 0], sizes = [1, 64], strides = [1, 1]} : vector<16x64xf32> to vector<1x64xf32>
    %32 = vector.extract_strided_slice %29 {offsets = [8, 0], sizes = [1, 64], strides = [1, 1]} : vector<16x64xf32> to vector<1x64xf32>
    %33 = tpu.concatenate %31, %32 in 0 : vector<1x64xf32>, vector<1x64xf32> -> vector<2x64xf32>
    %34 = vector.broadcast %2 : vector<1x64xf32> to vector<2x64xf32>
    %35 = arith.mulf %33, %34 : vector<2x64xf32>
    %36 = vector.broadcast %3 : vector<1x64xf32> to vector<2x64xf32>
    %37 = arith.addf %35, %36 : vector<2x64xf32>
    %38 = arith.negf %37 : vector<2x64xf32>
    %39 = math.exp %38 : vector<2x64xf32>
    %cst_18 = arith.constant 1.000000e+00 : f32
    %40 = vector.broadcast %cst_18 : f32 to vector<2x64xf32>
    %41 = arith.addf %40, %39 : vector<2x64xf32>
    %42 = arith.divf %40, %41 : vector<2x64xf32>
    %43 = arith.mulf %37, %42 : vector<2x64xf32>
    %44 = arith.truncf %43 : vector<2x64xf32> to vector<2x64xbf16>
    %c0_19 = arith.constant 0 : index
    %c0_20 = arith.constant 0 : index
    %45 = vector.load %arg2[%c0_19, %c0_20] : memref<64x34xbf16, #tpu.memory_space<vmem>>, vector<64x34xbf16>
    %cst_21 = arith.constant dense<0.000000e+00> : vector<2x34xf32>
    %46 = tpu.matmul %44, %45, %cst_21 {dimension_numbers = #tpu.dot_dimension_numbers<[1], [0], [0], [1], [0, 0, 1, 1], [], []>} : vector<2x64xbf16>, vector<64x34xbf16>, vector<2x34xf32> -> vector<2x34xf32>
    %47 = vector.extract_strided_slice %46 {offsets = [0, 0], sizes = [2, 2], strides = [1, 1]} : vector<2x34xf32> to vector<2x2xf32>
    %48 = vector.extract_strided_slice %46 {offsets = [0, 2], sizes = [2, 16], strides = [1, 1]} : vector<2x34xf32> to vector<2x16xf32>
    %49 = vector.extract_strided_slice %46 {offsets = [0, 18], sizes = [2, 16], strides = [1, 1]} : vector<2x34xf32> to vector<2x16xf32>
    %50 = arith.truncf %47 : vector<2x2xf32> to vector<2x2xbf16>
    %c0_22 = arith.constant 0 : index
    %c0_23 = arith.constant 0 : index
    %51 = vector.load %arg3[%c0_22, %c0_23] : memref<2x64xbf16, #tpu.memory_space<vmem>>, vector<2x64xbf16>
    %cst_24 = arith.constant dense<0.000000e+00> : vector<2x64xf32>
    %52 = tpu.matmul %50, %51, %cst_24 {dimension_numbers = #tpu.dot_dimension_numbers<[1], [0], [0], [1], [0, 0, 1, 1], [], []>} : vector<2x2xbf16>, vector<2x64xbf16>, vector<2x64xf32> -> vector<2x64xf32>
    %53 = vector.broadcast %4 : vector<1x64xf32> to vector<2x64xf32>
    %54 = arith.addf %52, %53 : vector<2x64xf32>
    %cst_25 = arith.constant 2.000000e+01 : f32
    %55 = vector.broadcast %cst_25 : f32 to vector<2x64xf32>
    %56 = arith.cmpf ogt, %54, %55 : vector<2x64xf32>
    %cst_26 = arith.constant 2.000000e+01 : f32
    %57 = vector.broadcast %cst_26 : f32 to vector<2x64xf32>
    %58 = arith.minimumf %54, %57 : vector<2x64xf32>
    %59 = math.exp %58 : vector<2x64xf32>
    %cst_27 = arith.constant 1.000000e+00 : f32
    %60 = vector.broadcast %cst_27 : f32 to vector<2x64xf32>
    %61 = arith.addf %60, %59 : vector<2x64xf32>
    %62 = math.log %61 : vector<2x64xf32>
    %63 = arith.select %56, %54, %62 : vector<2x64xi1>, vector<2x64xf32>
    %64 = arith.mulf %48, %49 : vector<2x16xf32>
    %cst_28 = arith.constant dense<0.000000e+00> : vector<2xf32>
    %65 = vector.multi_reduction <add>, %64, %cst_28 [1] : vector<2x16xf32> to vector<2xf32>
    %66 = vector.shape_cast %65 : vector<2xf32> to vector<2x1xf32>
    %67 = vector.broadcast %66 : vector<2x1xf32> to vector<2x64xf32>
    %68 = arith.mulf %63, %67 : vector<2x64xf32>
    %69 = vector.broadcast %5 : vector<1x64xf32> to vector<2x64xf32>
    %70 = arith.addf %68, %69 : vector<2x64xf32>
    %71 = arith.mulf %43, %70 : vector<2x64xf32>
    %72 = arith.negf %30 : vector<16x64xf32>
    %73 = math.exp %72 : vector<16x64xf32>
    %cst_29 = arith.constant 1.000000e+00 : f32
    %74 = vector.broadcast %cst_29 : f32 to vector<16x64xf32>
    %75 = arith.addf %74, %73 : vector<16x64xf32>
    %76 = arith.divf %74, %75 : vector<16x64xf32>
    %77 = arith.mulf %30, %76 : vector<16x64xf32>
    %78 = vector.extract_strided_slice %77 {offsets = [0, 0], sizes = [8, 64], strides = [1, 1]} : vector<16x64xf32> to vector<8x64xf32>
    %79 = vector.extract_strided_slice %71 {offsets = [0, 0], sizes = [1, 64], strides = [1, 1]} : vector<2x64xf32> to vector<1x64xf32>
    %80 = vector.broadcast %79 : vector<1x64xf32> to vector<8x64xf32>
    %81 = arith.mulf %78, %80 : vector<8x64xf32>
    %82 = vector.extract_strided_slice %77 {offsets = [8, 0], sizes = [8, 64], strides = [1, 1]} : vector<16x64xf32> to vector<8x64xf32>
    %83 = vector.extract_strided_slice %71 {offsets = [1, 0], sizes = [1, 64], strides = [1, 1]} : vector<2x64xf32> to vector<1x64xf32>
    %84 = vector.broadcast %83 : vector<1x64xf32> to vector<8x64xf32>
    %85 = arith.mulf %82, %84 : vector<8x64xf32>
    %86 = tpu.concatenate %81, %85 in 0 : vector<8x64xf32>, vector<8x64xf32> -> vector<16x64xf32>
    %87 = arith.truncf %86 : vector<16x64xf32> to vector<16x64xbf16>
    %c0_30 = arith.constant 0 : index
    %c0_31 = arith.constant 0 : index
    %88 = vector.load %arg4[%c0_30, %c0_31] : memref<64x32xbf16, #tpu.memory_space<vmem>>, vector<64x32xbf16>
    %cst_32 = arith.constant dense<0.000000e+00> : vector<16x32xf32>
    %89 = tpu.matmul %87, %88, %cst_32 {dimension_numbers = #tpu.dot_dimension_numbers<[1], [0], [0], [1], [0, 0, 1, 1], [], []>} : vector<16x64xbf16>, vector<64x32xbf16>, vector<16x32xf32> -> vector<16x32xf32>
    %90 = vector.broadcast %6 : vector<1x32xf32> to vector<16x32xf32>
    %91 = arith.addf %89, %90 : vector<16x32xf32>
    %92 = arith.addf %11, %91 : vector<16x32xf32>
    %cst_33 = arith.constant dense<0.000000e+00> : vector<16xf32>
    %93 = vector.multi_reduction <add>, %92, %cst_33 [1] : vector<16x32xf32> to vector<16xf32>
    %94 = vector.shape_cast %93 : vector<16xf32> to vector<16x1xf32>
    %cst_34 = arith.constant 3.200000e+01 : f32
    %95 = vector.broadcast %cst_34 : f32 to vector<16x1xf32>
    %96 = arith.divf %94, %95 : vector<16x1xf32>
    %97 = vector.broadcast %96 : vector<16x1xf32> to vector<16x32xf32>
    %98 = arith.subf %92, %97 : vector<16x32xf32>
    %99 = vector.broadcast %96 : vector<16x1xf32> to vector<16x32xf32>
    %100 = arith.subf %92, %99 : vector<16x32xf32>
    %101 = arith.mulf %98, %100 : vector<16x32xf32>
    %cst_35 = arith.constant dense<0.000000e+00> : vector<16xf32>
    %102 = vector.multi_reduction <add>, %101, %cst_35 [1] : vector<16x32xf32> to vector<16xf32>
    %103 = vector.shape_cast %102 : vector<16xf32> to vector<16x1xf32>
    %cst_36 = arith.constant 3.200000e+01 : f32
    %104 = vector.broadcast %cst_36 : f32 to vector<16x1xf32>
    %105 = arith.divf %103, %104 : vector<16x1xf32>
    %106 = vector.broadcast %96 : vector<16x1xf32> to vector<16x32xf32>
    %107 = arith.subf %92, %106 : vector<16x32xf32>
    %cst_37 = arith.constant 9.99999974E-6 : f32
    %108 = vector.broadcast %cst_37 : f32 to vector<16x1xf32>
    %109 = arith.addf %105, %108 : vector<16x1xf32>
    %110 = math.rsqrt %109 : vector<16x1xf32>
    %111 = vector.broadcast %110 : vector<16x1xf32> to vector<16x32xf32>
    %112 = arith.mulf %107, %111 : vector<16x32xf32>
    %113 = vector.broadcast %7 : vector<1x32xf32> to vector<16x32xf32>
    %114 = arith.mulf %112, %113 : vector<16x32xf32>
    %115 = vector.broadcast %8 : vector<1x32xf32> to vector<16x32xf32>
    %116 = arith.addf %114, %115 : vector<16x32xf32>
    %117 = arith.truncf %116 : vector<16x32xf32> to vector<16x32xbf16>
    %c0_38 = arith.constant 0 : index
    %c0_39 = arith.constant 0 : index
    %118 = vector.load %arg5[%c0_38, %c0_39] : memref<32x128xbf16, #tpu.memory_space<vmem>>, vector<32x128xbf16>
    %cst_40 = arith.constant dense<0.000000e+00> : vector<16x128xf32>
    %119 = tpu.matmul %117, %118, %cst_40 {dimension_numbers = #tpu.dot_dimension_numbers<[1], [0], [0], [1], [0, 0, 1, 1], [], []>} : vector<16x32xbf16>, vector<32x128xbf16>, vector<16x128xf32> -> vector<16x128xf32>
    %120 = vector.broadcast %9 : vector<1x128xf32> to vector<16x128xf32>
    %121 = arith.addf %119, %120 : vector<16x128xf32>
    %cst_41 = arith.constant 5.000000e-01 : f32
    %122 = vector.broadcast %cst_41 : f32 to vector<16x128xf32>
    %123 = arith.mulf %122, %121 : vector<16x128xf32>
    %cst_42 = arith.constant 0.707106769 : f32
    %124 = vector.broadcast %cst_42 : f32 to vector<16x128xf32>
    %125 = arith.mulf %121, %124 : vector<16x128xf32>
    %cst_43 = arith.constant 0.000000e+00 : f32
    %126 = vector.broadcast %cst_43 : f32 to vector<16x128xf32>
    %127 = arith.cmpf oge, %125, %126 : vector<16x128xf32>
    %cst_44 = arith.constant 1.000000e+00 : f32
    %cst_45 = arith.constant -1.000000e+00 : f32
    %128 = vector.broadcast %cst_44 : f32 to vector<16x128xf32>
    %129 = vector.broadcast %cst_45 : f32 to vector<16x128xf32>
    %130 = arith.select %127, %128, %129 : vector<16x128xi1>, vector<16x128xf32>
    %131 = math.absf %125 : vector<16x128xf32>
    %cst_46 = arith.constant 0.327591091 : f32
    %132 = vector.broadcast %cst_46 : f32 to vector<16x128xf32>
    %133 = arith.mulf %132, %131 : vector<16x128xf32>
    %cst_47 = arith.constant 1.000000e+00 : f32
    %134 = vector.broadcast %cst_47 : f32 to vector<16x128xf32>
    %135 = arith.addf %134, %133 : vector<16x128xf32>
    %cst_48 = arith.constant 1.000000e+00 : f32
    %136 = vector.broadcast %cst_48 : f32 to vector<16x128xf32>
    %137 = arith.divf %136, %135 : vector<16x128xf32>
    %cst_49 = arith.constant 1.06140542 : f32
    %138 = vector.broadcast %cst_49 : f32 to vector<16x128xf32>
    %139 = arith.mulf %138, %137 : vector<16x128xf32>
    %cst_50 = arith.constant -1.45315206 : f32
    %140 = vector.broadcast %cst_50 : f32 to vector<16x128xf32>
    %141 = arith.addf %139, %140 : vector<16x128xf32>
    %142 = arith.mulf %141, %137 : vector<16x128xf32>
    %cst_51 = arith.constant 1.42141378 : f32
    %143 = vector.broadcast %cst_51 : f32 to vector<16x128xf32>
    %144 = arith.addf %142, %143 : vector<16x128xf32>
    %145 = arith.mulf %144, %137 : vector<16x128xf32>
    %cst_52 = arith.constant -0.284496725 : f32
    %146 = vector.broadcast %cst_52 : f32 to vector<16x128xf32>
    %147 = arith.addf %145, %146 : vector<16x128xf32>
    %148 = arith.mulf %147, %137 : vector<16x128xf32>
    %cst_53 = arith.constant 0.254829586 : f32
    %149 = vector.broadcast %cst_53 : f32 to vector<16x128xf32>
    %150 = arith.addf %148, %149 : vector<16x128xf32>
    %151 = arith.mulf %150, %137 : vector<16x128xf32>
    %cst_54 = arith.constant 0.000000e+00 : f32
    %152 = vector.broadcast %cst_54 : f32 to vector<16x128xf32>
    %153 = arith.subf %152, %131 : vector<16x128xf32>
    %154 = arith.mulf %153, %131 : vector<16x128xf32>
    %155 = math.exp %154 : vector<16x128xf32>
    %156 = arith.mulf %151, %155 : vector<16x128xf32>
    %cst_55 = arith.constant 1.000000e+00 : f32
    %157 = vector.broadcast %cst_55 : f32 to vector<16x128xf32>
    %158 = arith.subf %157, %156 : vector<16x128xf32>
    %159 = arith.mulf %130, %158 : vector<16x128xf32>
    %cst_56 = arith.constant 1.000000e+00 : f32
    %160 = vector.broadcast %cst_56 : f32 to vector<16x128xf32>
    %161 = arith.addf %160, %159 : vector<16x128xf32>
    %162 = arith.mulf %123, %161 : vector<16x128xf32>
    %163 = arith.truncf %162 : vector<16x128xf32> to vector<16x128xbf16>
    %c0_57 = arith.constant 0 : index
    %c0_58 = arith.constant 0 : index
    %164 = vector.load %arg6[%c0_57, %c0_58] : memref<128x32xbf16, #tpu.memory_space<vmem>>, vector<128x32xbf16>
    %cst_59 = arith.constant dense<0.000000e+00> : vector<16x32xf32>
    %165 = tpu.matmul %163, %164, %cst_59 {dimension_numbers = #tpu.dot_dimension_numbers<[1], [0], [0], [1], [0, 0, 1, 1], [], []>} : vector<16x128xbf16>, vector<128x32xbf16>, vector<16x32xf32> -> vector<16x32xf32>
    %166 = vector.broadcast %10 : vector<1x32xf32> to vector<16x32xf32>
    %167 = arith.addf %165, %166 : vector<16x32xf32>
    %168 = arith.addf %92, %167 : vector<16x32xf32>
    %c0_60 = arith.constant 0 : index
    %c0_61 = arith.constant 0 : index
    %169 = vector.load %arg8[%c0_60, %c0_61] : memref<16x32xf32, #tpu.memory_space<vmem>>, vector<16x32xf32>
    tpu.vector_store %arg8[%c0_60, %c0_61], %168 {strides = array<i32>} : memref<16x32xf32, #tpu.memory_space<vmem>>, vector<16x32xf32>,
    return
  }
}

</mosaic_0001>

<bundles_post_ra>
// kernel: tpu_custom_call.1
= control target key start
LH: loop header
LB: loop body
LE: loop exit
PB: predicated region body
PF: predicated region fallthrough
CT: control target
= control target key end

     0   :  { %vm46_vm0 = vcmask 261120   ;;  %s1044_s0 = inlined_call_operand.vmem [shape: f32[16,32], index: 0, kind: input, shape index: {}]   ;;  %s1045_s1 = inlined_call_operand.vmem [shape: bf16[32,128], index: 1, kind: input, shape index: {}]   ;;  %s1046_s2 = inlined_call_operand.vmem [shape: bf16[64,34], index: 2, kind: input, shape index: {}]   ;;  %s1047_s3 = inlined_call_operand.vmem [shape: bf16[2,64], index: 3, kind: input, shape index: {}]   ;;  %s1048_s4 = inlined_call_operand.vmem [shape: bf16[64,32], index: 4, kind: input, shape index: {}]   ;;  %s1049_s5 = inlined_call_operand.vmem [shape: bf16[32,128], index: 5, kind: input, shape index: {}]   ;;  %s1050_s6 = inlined_call_operand.vmem [shape: bf16[128,32], index: 6, kind: input, shape index: {}]   ;;  %s1051_s7 = inlined_call_operand.vmem [shape: f32[11,128], index: 7, kind: input, shape index: {}]   ;;  %s1052_s8 = inlined_call_operand.hbm [shape: f32[16,32], index: 8, kind: output, shape index: {}]  }
   0x1   :  { %v869_v0 = vld [vmem:[%s1044_s0] sm:$0xff]  ;;  %v874_v1 = vld [vmem:[%s1044_s0 + $0x8] sm:$0xff] }
   0x2   :  { %v44_v2 = vmul.f32 %v869_v0, %v869_v0 }
   0x4   :  { %v47_v3 = vsel %vm46_vm0, %v44_v2, 0.0 }
   0x5   :  { %48 = vadd.xlane.f32.xlu0 %v47_v3 }
   0x6   :  { %13 = vsyncpa [#allocation3], 0  ;;  %v45_v4 = vmul.f32 %v874_v1, %v874_v1  ;;  %v813_v6 = vmov 32.0   ;;  %v715_v12 = vld [vmem:[%s1045_s1 + $0x8] sm:$0xff]  ;;  %v714_v14 = vld [vmem:[%s1045_s1] sm:$0xff]  ;;  %vm127_vm8 = vcmask 1040384  }
   0x7   :  { %753 = vrcp.f32 %v813_v6  ;;  %116 = vmatpush.bf16.msra.mxu1 %v715_v12  ;;  %v742_v35 = vld [vmem:[%s1051_s7] ss:$0 sm:$0xff]  ;;  %v719_v41 = vld [vmem:[%s1046_s2 + $0x18] sm:$0xff]  ;;  %v718_v42 = vld [vmem:[%s1046_s2 + $0x10] sm:$0xff]  ;;  %vm186_vm13 = vcmask 523264   ;;  %vm206_vm14 = vcmask 15360  }
   0x8   :  { %v50_v5 = vsel %vm46_vm0, %v45_v4, 0.0  ;;  %v717_v43 = vld [vmem:[%s1046_s2 + $0x8] sm:$0xff]  ;;  %v716_v45 = vld [vmem:[%s1046_s2] sm:$0xff]  ;;  %s814_s28 = smov 112   ;;  %s815_s29 = smov 126   ;;  %vm243_vm15 = vcmask 123904  }
   0x9   :  { %v743_v46 = vld [vmem:[%s1051_s7 + $0x1] ss:$0 sm:$0xff]  ;;  %v744_v49 = vld [vmem:[%s1051_s7 + $0x2] ss:$0 sm:$0xff]  ;;  %v745_v52 = vld [vmem:[%s1051_s7 + $0x3] ss:$0 sm:$0xff] }
   0xa   :  { %s816_s10 = smov 64   ;;  %s818_s18 = smov [#allocation2]  }
   0xb   :  { %117 = vmatpush.bf16.msra.mxu1 %v714_v14  ;;  %s612_s19 = sshll.u32 %s818_s18, 4  ;;  %s614_s22 = sshll.u32 %s1052_s8, 4  ;;  %s613_s19 = int_to_ptr.vmem [resolvable:$true] %s612_s19  ;;  %s615_s22 = int_to_ptr.hbm [resolvable:$true] %s614_s22 }
   0xd   :  { %51 = vadd.xlane.f32.xlu0 %v50_v5  ;;  %v754_v7 = vpop.eup %753 }
   0xe   :  { %v54_v8 = vmul.f32 32.0, %v754_v7  ;;  %vm58_vm1 = vweird.f32 %v754_v7 }
   0xf   :  { %194 = vmatpush.bf16.msrb.mxu1 %v719_v41 }
  0x10   :  { %v55_v9 = vsub.f32 1.0, %v54_v8 }
  0x12   :  { %v56_v10 = vmul.f32 %v754_v7, %v55_v9  ;;  %v204_v9 = vld [vmem:[%s1047_s3] sm:$0x1] }
  0x13   :  { %195 = vmatpush.bf16.msrb.mxu1 %v718_v42 }
  0x14   :  { %v57_v11 = vadd.f32 %v754_v7, %v56_v10  ;;  %v211_v10 = vsel %vm127_vm8, %v204_v9, 0 }
  0x15   :  { %220 = vmatpush.bf16.msra.mxu2 %v211_v10 }
  0x16   :  { %v885_v13 = vsel %vm58_vm1, %v754_v7, %v57_v11 }
  0x17   :  { %196 = vmatpush.bf16.msrb.mxu1 %v717_v43 }
  0x1b   :  { %197 = vmatpush.bf16.msrb.mxu1 %v716_v45 }
  0x78   :  { %v49_v15 = vpop.xlane.xlu0 %48 }
  0x79   :  { %v60_v16 = vmul.f32 %v885_v13, %v49_v15 }
  0x7b   :  { %v62_v17 = vadd.f32 1e-05, %v60_v16 }
  0x7d   :  { %755 = vrsqrt.f32 %v62_v17  ;;  %vm70_vm3 = vweird.f32 %v62_v17 }
  0x80   :  { %v52_v18 = vpop.xlane.xlu0 %51 }
  0x81   :  { %v61_v19 = vmul.f32 %v885_v13, %v52_v18 }
  0x83   :  { %v756_v20 = vpop.eup %755  ;;  %v63_v21 = vadd.f32 1e-05, %v61_v19 }
  0x84   :  { %v65_v22 = vmul.f32 %v756_v20, %v62_v17  ;;  %vm71_vm2 = vweird.f32 %v756_v20 }
  0x85   :  { %757 = vrsqrt.f32 %v63_v21  ;;  %vm72_vm4 = vmor %vm70_vm3, %vm71_vm2  ;;  %vm80_vm6 = vweird.f32 %v63_v21 }
  0x86   :  { %v66_v23 = vmul.f32 %v756_v20, %v65_v22 }
  0x88   :  { %v67_v24 = vmul.f32 0.5, %v66_v23 }
  0x8a   :  { %v68_v25 = vsub.f32 1.5, %v67_v24 }
  0x8b   :  { %v758_v26 = vpop.eup %757 }
  0x8c   :  { %v75_v27 = vmul.f32 %v758_v26, %v63_v21  ;;  %v69_v28 = vmul.f32 %v756_v20, %v68_v25  ;;  %vm81_vm5 = vweird.f32 %v758_v26  ;;  %v746_v21 = vld [vmem:[%s1051_s7 + $0x4] ss:$0 sm:$0xff] }
  0x8d   :  { %vm82_vm7 = vmor %vm80_vm6, %vm81_vm5 }
  0x8e   :  { %v76_v29 = vmul.f32 %v758_v26, %v75_v27  ;;  %v73_v31 = vsel %vm72_vm4, %v756_v20, %v69_v28 }
  0x8f   :  { %v84_v34 = vmul.f32 %v73_v31, %v869_v0 }
  0x90   :  { %v77_v30 = vmul.f32 0.5, %v76_v29  ;;  %v747_v29 = vld [vmem:[%s1051_s7 + $0x5] ss:$0 sm:$0xff] }
  0x91   :  { %v87_v38 = vmul.f32 %v742_v35, %v84_v34 }
  0x92   :  { %v78_v32 = vsub.f32 1.5, %v77_v30 }
  0x94   :  { %v79_v33 = vmul.f32 %v758_v26, %v78_v32 }
  0x96   :  { %v83_v36 = vsel %vm82_vm7, %v758_v26, %v79_v33 }
  0x97   :  { %v85_v37 = vmul.f32 %v83_v36, %v874_v1 }
  0x99   :  { %v88_v39 = vmul.f32 %v742_v35, %v85_v37 }
  0x9b   :  { %v89_v40 = vpack.c.bf16 %v88_v39, %v87_v38 }
  0x9d   :  { %634 = vmatmul.msk.bf16.vlgmr.msra.gmra.mxu1 %vm46_vm0, %v89_v40 }
 0x11a   :  { %v119_v44 = vpop.f32.mrf.mxu1 }
 0x11b   :  { %v918_v50 = vadd.f32 %v743_v46, %v119_v44  ;;  %v723_v44 = vld [vmem:[%s1048_s4 + $0x18] sm:$0xff] }
 0x11c   :  { %347 = vmatpush.bf16.msra.mxu3 %v723_v44 }
 0x11d   :  { %v654_v37 = vmul.f32 -1.442695, %v918_v50 }
 0x122   :  { %v121_v47 = vpop.f32.mrf.mxu1 }
 0x123   :  { %v913_v48 = vadd.f32 %v743_v46, %v121_v47  ;;  %v722_v46 = vld [vmem:[%s1048_s4 + $0x10] sm:$0xff] }
 0x124   :  { %348 = vmatpush.bf16.msra.mxu3 %v722_v46 }
 0x125   :  { %v125_v51 = vrot.slane %v913_v48, 7  ;;  %v655_v38 = vmul.f32 -1.442695, %v913_v48 }
 0x127   :  { %v128_v53 = vsel %vm127_vm8, %v918_v50, %v125_v51  ;;  %v721_v51 = vld [vmem:[%s1048_s4 + $0x8] sm:$0xff] }
 0x128   :  { %v130_v54 = vmul.f32 %v744_v49, %v128_v53  ;;  %349 = vmatpush.bf16.msra.mxu3 %v721_v51 }
 0x12a   :  { %v132_v55 = vadd.f32 %v745_v52, %v130_v54  ;;  %v720_v54 = vld [vmem:[%s1048_s4] sm:$0xff] }
 0x12c   :  { %v635_v56 = vmul.f32 -1.442695, %v132_v55  ;;  %350 = vmatpush.bf16.msra.mxu3 %v720_v54 }
 0x12e   :  { %759 = vpow2.f32 %v635_v56 }
 0x134   :  { %v760_v57 = vpop.eup %759 }
 0x135   :  { %v136_v58 = vadd.f32 1.0, %v760_v57 }
 0x137   :  { %761 = vrcp.f32 %v136_v58  ;;  %v148_v62 = vand.u32 2147483648, %v136_v58  ;;  %v146_v2 = vand.u32 2147483647, %v136_v58  ;;  %vm142_vm10 = vweird.f32 %v136_v58 }
 0x139   :  { %v149_v4 = vor.u32 1.1754944e-38, %v148_v62  ;;  %vm147_vm12 = vcmp.eq.f32.partialorder %v146_v2, 8.507059e+37 }
 0x13d   :  { %v762_v59 = vpop.eup %761 }
 0x13e   :  { %v138_v60 = vmul.f32 %v762_v59, %v136_v58  ;;  %vm143_vm9 = vweird.f32 %v762_v59 }
 0x13f   :  { %vm144_vm11 = vmor %vm142_vm10, %vm143_vm9 }
 0x140   :  { %v139_v61 = vsub.f32 1.0, %v138_v60 }
 0x142   :  { %v140_v63 = vmul.f32 %v762_v59, %v139_v61 }
 0x144   :  { %v141_v3 = vadd.f32 %v762_v59, %v140_v63 }
 0x146   :  { %v145_v5 = vsel %vm144_vm11, %v762_v59, %v141_v3 }
 0x147   :  { %v150_v6 = vsel %vm147_vm12, %v149_v4, %v145_v5 }
 0x148   :  { %v152_v7 = vmul.f32 %v150_v6, %v132_v55 }
 0x14a   :  { %v153_v8 = vpack.c.bf16 %v152_v7, %v152_v7 }
 0x14c   :  { %652 = vmatmul.msk.bf16.vlgmr.msrb.gmra.mxu1 %vm186_vm13, %v153_v8 }
 0x1c9   :  { %v199_v11 = vpop.f32.mrf.mxu1 }
 0x1ca   :  { %v203_v12 = vpack.c.bf16 %v199_v11, %v199_v11  ;;  %235 = vrot.lane.b32.xlu1 %v199_v11, %s814_s28 }
 0x1cc   :  { %653 = vmatmul.msk.bf16.vlgmr.msra.gmra.mxu2 %vm206_vm14, %v203_v12 }
 0x1d1   :  { %v201_v14 = vpop.f32.mrf.mxu1 }
 0x23c   :  { %v236_v15 = vpop.permute.xlu1 %235 }
 0x23d   :  { %v238_v16 = vmul.f32 %v236_v15, %v199_v11 }
 0x23f   :  { %240 = vrot.lane.b32.xlu1 %v238_v16, %s815_s29  ;;  %v748_v16 = vld [vmem:[%s1051_s7 + $0x6] ss:$0 sm:$0xff] }
 0x24f   :  { %v222_v17 = vpop.f32.mrf.mxu2 }
 0x250   :  { %v223_v22 = vadd.f32 %v746_v21, %v222_v17 }
 0x252   :  { %v227_v23 = vmin.f32 %v223_v22, 20.0  ;;  %vm226_vm1 = vcmp.gt.f32.partialorder %v223_v22, 20.0 }
 0x254   :  { %v228_v24 = vmul.f32 1.442695, %v227_v23 }
 0x256   :  { %763 = vpow2.f32 %v228_v24 }
 0x257   :  { %v224_v18 = vpop.f32.mrf.mxu2 }
 0x25c   :  { %v764_v25 = vpop.eup %763 }
 0x25d   :  { %v230_v26 = vadd.f32 1.0, %v764_v25 }
 0x25f   :  { %765 = vlog2.f32 %v230_v26 }
 0x260   :  { %767 = vpow2.f32 %v654_v37 }
 0x261   :  { %769 = vpow2.f32 %v655_v38 }
 0x265   :  { %v766_v27 = vpop.eup %765 }
 0x266   :  { %v232_v28 = vmul.f32 0.6931472, %v766_v27  ;;  %v768_v39 = vpop.eup %767 }
 0x267   :  { %v770_v40 = vpop.eup %769  ;;  %v257_v41 = vadd.f32 1.0, %v768_v39 }
 0x268   :  { %v233_v31 = vsel %vm226_vm1, %v223_v22, %v232_v28  ;;  %v258_v42 = vadd.f32 1.0, %v770_v40 }
 0x269   :  { %771 = vrcp.f32 %v257_v41  ;;  %vm264_vm4 = vweird.f32 %v257_v41  ;;  %v270_v59 = vand.u32 2147483648, %v257_v41  ;;  %v268_v61 = vand.u32 2147483647, %v257_v41 }
 0x26a   :  { %773 = vrcp.f32 %v258_v42  ;;  %v285_v60 = vand.u32 2147483648, %v258_v42  ;;  %vm279_vm6 = vweird.f32 %v258_v42  ;;  %v283_v62 = vand.u32 2147483647, %v258_v42 }
 0x26b   :  { %v271_v3 = vor.u32 1.1754944e-38, %v270_v59  ;;  %vm269_vm8 = vcmp.eq.f32.partialorder %v268_v61, 8.507059e+37 }
 0x26c   :  { %v286_v4 = vor.u32 1.1754944e-38, %v285_v60  ;;  %vm284_vm9 = vcmp.eq.f32.partialorder %v283_v62, 8.507059e+37 }
 0x26f   :  { %v772_v43 = vpop.eup %771 }
 0x270   :  { %v774_v45 = vpop.eup %773  ;;  %v260_v47 = vmul.f32 %v772_v43, %v257_v41  ;;  %vm265_vm2 = vweird.f32 %v772_v43 }
 0x271   :  { %v275_v49 = vmul.f32 %v774_v45, %v258_v42  ;;  %vm280_vm3 = vweird.f32 %v774_v45  ;;  %vm266_vm5 = vmor %vm264_vm4, %vm265_vm2 }
 0x272   :  { %v261_v52 = vsub.f32 1.0, %v260_v47  ;;  %vm281_vm7 = vmor %vm279_vm6, %vm280_vm3 }
 0x273   :  { %v276_v53 = vsub.f32 1.0, %v275_v49 }
 0x274   :  { %v262_v55 = vmul.f32 %v772_v43, %v261_v52 }
 0x275   :  { %v277_v56 = vmul.f32 %v774_v45, %v276_v53 }
 0x276   :  { %v263_v57 = vadd.f32 %v772_v43, %v262_v55 }
 0x277   :  { %v278_v58 = vadd.f32 %v774_v45, %v277_v56 }
 0x278   :  { %v267_v63 = vsel %vm266_vm5, %v772_v43, %v263_v57 }
 0x279   :  { %v282_v2 = vsel %vm281_vm7, %v774_v45, %v278_v58  ;;  %v272_v5 = vsel %vm269_vm8, %v271_v3, %v267_v63  ;;  %v750_v58 = vld [vmem:[%s1051_s7 + $0x8] ss:$0 sm:$0xff]  ;;  %v751_v63 = vld [vmem:[%s1051_s7 + $0x9] ss:$0 sm:$0xff] }
 0x27a   :  { %v287_v6 = vsel %vm284_vm9, %v286_v4, %v282_v2  ;;  %v289_v8 = vmul.f32 %v272_v5, %v918_v50  ;;  %v733_v2 = vld [vmem:[%s1050_s6 + $0x38] sm:$0xff]  ;;  %v732_v5 = vld [vmem:[%s1050_s6 + $0x30] sm:$0xff] }
 0x27b   :  { %v290_v9 = vmul.f32 %v287_v6, %v913_v48  ;;  %590 = vmatpush.bf16.msra.mxu0 %v733_v2 }
 0x27f   :  { %591 = vmatpush.bf16.msra.mxu0 %v732_v5 }
 0x2b1   :  { %v241_v19 = vpop.permute.xlu1 %240 }
 0x2b2   :  { %v244_v20 = vsel %vm243_vm15, %v241_v19, 0.0 }
 0x2b3   :  { %245 = vadd.xlane.f32.xlu2 %v244_v20 }
 0x326   :  { %v246_v30 = vpop.xlane.xlu2 %245 }
 0x327   :  { %v247_v32 = vmul.f32 %v246_v30, %v233_v31  ;;  %v725_v31 = vld [vmem:[%s1049_s5 + $0x8] sm:$0xff] }
 0x328   :  { %436 = vmatpush.bf16.msrb.mxu2 %v725_v31 }
 0x329   :  { %v249_v33 = vadd.f32 %v747_v29, %v247_v32 }
 0x32b   :  { %v250_v34 = vmul.f32 %v249_v33, %v152_v7 }
 0x32d   :  { %v297_v35 = vperm.slane %v250_v34, 1  ;;  %v291_v36 = vperm.slane %v250_v34, 0  ;;  %v724_v34 = vld [vmem:[%s1049_s5] sm:$0xff]  ;;  %s820_s5 = smov 8  }
 0x32e   :  { %437 = vmatpush.bf16.msrb.mxu2 %v724_v34 }
 0x32f   :  { %299 = vrot.lane.b32.xlu0 %v297_v35, %s816_s10  ;;  %293 = vrot.lane.b32.xlu2 %v291_v36, %s816_s10 }
 0x389   :  { %v294_v7 = vpop.permute.xlu2 %293 }
 0x38a   :  { %v296_v11 = vmul.f32 %v294_v7, %v289_v8  ;;  %v731_v8 = vld [vmem:[%s1050_s6 + $0x28] sm:$0xff] }
 0x38b   :  { %592 = vmatpush.bf16.msra.mxu0 %v731_v8 }
 0x3a1   :  { %v300_v10 = vpop.permute.xlu0 %299 }
 0x3a2   :  { %v302_v12 = vmul.f32 %v300_v10, %v290_v9 }
 0x3a4   :  { %v303_v14 = vpack.c.bf16 %v302_v12, %v296_v11 }
 0x3a6   :  { %314 = vrot.lane.b32.xlu1 %v303_v14, %s816_s10  ;;  %v730_v14 = vld [vmem:[%s1050_s6 + $0x20] sm:$0xff] }
 0x3a7   :  { %593 = vmatpush.bf16.msra.mxu0 %v730_v14 }
 0x418   :  { %v315_v15 = vpop.permute.xlu1 %314 }
 0x419   :  { %672 = vmatmul.msk.bf16.vlgmr.msra.gmra.mxu3 %vm186_vm13, %v315_v15 }
 0x49c   :  { %v352_v17 = vpop.f32.mrf.mxu3 }
 0x49d   :  { %v353_v18 = vadd.f32 %v748_v16, %v352_v17 }
 0x49f   :  { %v961_v19 = vadd.f32 %v353_v18, %v869_v0 }
 0x4a1   :  { %v359_v48 = vsel %vm46_vm0, %v961_v19, 0.0 }
 0x4a2   :  { %360 = vadd.xlane.f32.xlu1 %v359_v48 }
 0x4a4   :  { %v354_v50 = vpop.f32.mrf.mxu3 }
 0x4a5   :  { %v355_v20 = vadd.f32 %v748_v16, %v354_v50  ;;  %v729_v16 = vld [vmem:[%s1050_s6 + $0x18] sm:$0xff]  ;;  %v728_v50 = vld [vmem:[%s1050_s6 + $0x10] sm:$0xff] }
 0x4a6   :  { %594 = vmatpush.bf16.msra.mxu0 %v729_v16 }
 0x4a7   :  { %v966_v21 = vadd.f32 %v355_v20, %v874_v1 }
 0x4a9   :  { %v362_v22 = vsel %vm46_vm0, %v966_v21, 0.0 }
 0x4aa   :  { %363 = vadd.xlane.f32.xlu2 %v362_v22  ;;  %595 = vmatpush.bf16.msra.mxu0 %v728_v50 }
 0x515   :  { %v361_v23 = vpop.xlane.xlu1 %360 }
 0x516   :  { %v365_v24 = vmul.f32 %v361_v23, %v885_v13 }
 0x518   :  { %v367_v25 = vsub.f32 %v961_v19, %v365_v24  ;;  %v727_v24 = vld [vmem:[%s1050_s6 + $0x8] sm:$0xff] }
 0x519   :  { %596 = vmatpush.bf16.msra.mxu0 %v727_v24 }
 0x51a   :  { %v369_v0 = vmul.f32 %v367_v25, %v367_v25 }
 0x51c   :  { %v371_v26 = vsel %vm46_vm0, %v369_v0, 0.0 }
 0x51d   :  { %v364_v27 = vpop.xlane.xlu2 %363  ;;  %372 = vadd.xlane.f32.xlu0 %v371_v26 }
 0x51e   :  { %v366_v28 = vmul.f32 %v364_v27, %v885_v13 }
 0x520   :  { %v368_v29 = vsub.f32 %v966_v21, %v366_v28  ;;  %v726_v28 = vld [vmem:[%s1050_s6] sm:$0xff] }
 0x521   :  { %597 = vmatpush.bf16.msra.mxu0 %v726_v28 }
 0x522   :  { %v370_v1 = vmul.f32 %v368_v29, %v368_v29 }
 0x524   :  { %v374_v30 = vsel %vm46_vm0, %v370_v1, 0.0 }
 0x525   :  { %375 = vadd.xlane.f32.xlu1 %v374_v30 }
 0x590   :  { %v373_v32 = vpop.xlane.xlu0 %372 }
 0x591   :  { %v377_v33 = vmul.f32 %v373_v32, %v885_v13 }
 0x593   :  { %v379_v35 = vadd.f32 1e-05, %v377_v33 }
 0x595   :  { %775 = vrsqrt.f32 %v379_v35  ;;  %vm387_vm11 = vweird.f32 %v379_v35 }
 0x598   :  { %v376_v36 = vpop.xlane.xlu1 %375 }
 0x599   :  { %v378_v37 = vmul.f32 %v376_v36, %v885_v13  ;;  %v749_v13 = vld [vmem:[%s1051_s7 + $0x7] ss:$0 sm:$0xff] }
 0x59b   :  { %v776_v38 = vpop.eup %775  ;;  %v380_v39 = vadd.f32 1e-05, %v378_v37 }
 0x59c   :  { %v382_v40 = vmul.f32 %v776_v38, %v379_v35  ;;  %vm388_vm10 = vweird.f32 %v776_v38 }
 0x59d   :  { %777 = vrsqrt.f32 %v380_v39  ;;  %vm389_vm12 = vmor %vm387_vm11, %vm388_vm10  ;;  %vm397_vm14 = vweird.f32 %v380_v39 }
 0x59e   :  { %v383_v41 = vmul.f32 %v776_v38, %v382_v40 }
 0x5a0   :  { %v384_v42 = vmul.f32 0.5, %v383_v41 }
 0x5a2   :  { %v385_v43 = vsub.f32 1.5, %v384_v42 }
 0x5a3   :  { %v778_v44 = vpop.eup %777 }
 0x5a4   :  { %v386_v45 = vmul.f32 %v776_v38, %v385_v43  ;;  %v392_v46 = vmul.f32 %v778_v44, %v380_v39  ;;  %vm398_vm13 = vweird.f32 %v778_v44 }
 0x5a5   :  { %vm399_vm15 = vmor %vm397_vm14, %vm398_vm13 }
 0x5a6   :  { %v393_v47 = vmul.f32 %v778_v44, %v392_v46  ;;  %v390_v49 = vsel %vm389_vm12, %v776_v38, %v386_v45 }
 0x5a7   :  { %v401_v53 = vmul.f32 %v390_v49, %v367_v25 }
 0x5a8   :  { %v394_v51 = vmul.f32 0.5, %v393_v47 }
 0x5a9   :  { %v404_v57 = vmul.f32 %v749_v13, %v401_v53 }
 0x5aa   :  { %v395_v52 = vsub.f32 1.5, %v394_v51 }
 0x5ab   :  { %v407_v60 = vadd.f32 %v750_v58, %v404_v57 }
 0x5ac   :  { %v396_v54 = vmul.f32 %v778_v44, %v395_v52 }
 0x5ae   :  { %v400_v55 = vsel %vm399_vm15, %v778_v44, %v396_v54 }
 0x5af   :  { %v402_v56 = vmul.f32 %v400_v55, %v368_v29 }
 0x5b1   :  { %v405_v59 = vmul.f32 %v749_v13, %v402_v56 }
 0x5b3   :  { %v408_v61 = vadd.f32 %v750_v58, %v405_v59 }
 0x5b5   :  { %v409_v62 = vpack.c.bf16 %v408_v61, %v407_v60 }
 0x5b7   :  { %681 = vmatmul.msk.bf16.vlgmr.msrb.gmra.mxu2 %vm46_vm0, %v409_v62 }
 0x63a   :  { %v439_v3 = vpop.f32.mrf.mxu2 }
 0x63b   :  { %v997_v4 = vadd.f32 %v751_v63, %v439_v3 }
 0x63d   :  { %v1003_v6 = vmul.f32 0.70710677, %v997_v4 }
 0x63f   :  { %v452_v7 = vand.u32 2147483647, %v1003_v6  ;;  %vm448_vm9 = vcmp.ge.f32.partialorder %v1003_v6, 0.0 }
 0x641   :  { %v454_v9 = vmul.f32 0.3275911, %v452_v7  ;;  %v506_v33 = vsub.f32 0.0, %v452_v7 }
 0x642   :  { %v441_v10 = vpop.f32.mrf.mxu2 }
 0x643   :  { %v456_v11 = vadd.f32 1.0, %v454_v9  ;;  %v1009_v12 = vadd.f32 %v751_v63, %v441_v10  ;;  %v508_v40 = vmul.f32 %v506_v33, %v452_v7  ;;  %v817_v10 = vmov -1.0  }
 0x645   :  { %779 = vrcp.f32 %v456_v11  ;;  %v1015_v15 = vmul.f32 0.70710677, %v1009_v12  ;;  %v469_v25 = vand.u32 2147483648, %v456_v11  ;;  %v467_v26 = vand.u32 2147483647, %v456_v11 }
 0x646   :  { %vm463_vm2 = vweird.f32 %v456_v11  ;;  %v510_v46 = vmul.f32 1.442695, %v508_v40 }
 0x647   :  { %v453_v17 = vand.u32 2147483647, %v1015_v15  ;;  %v470_v29 = vor.u32 1.1754944e-38, %v469_v25  ;;  %vm468_vm4 = vcmp.eq.f32.partialorder %v467_v26, 8.507059e+37  ;;  %vm449_vm10 = vcmp.ge.f32.partialorder %v1015_v15, 0.0 }
 0x649   :  { %v455_v18 = vmul.f32 0.3275911, %v453_v17  ;;  %v507_v47 = vsub.f32 0.0, %v453_v17 }
 0x64b   :  { %v780_v48 = vpop.eup %779  ;;  %v457_v22 = vadd.f32 1.0, %v455_v18  ;;  %v509_v54 = vmul.f32 %v507_v47, %v453_v17  ;;  %v451_v18 = vsel %vm449_vm10, 1.0, %v817_v10 }
 0x64c   :  { %v459_v20 = vmul.f32 %v780_v48, %v456_v11  ;;  %vm464_vm1 = vweird.f32 %v780_v48  ;;  %v450_v11 = vsel %vm448_vm9, 1.0, %v817_v10 }
 0x64d   :  { %781 = vrcp.f32 %v457_v22  ;;  %vm465_vm3 = vmor %vm463_vm2, %vm464_vm1  ;;  %v484_v36 = vand.u32 2147483648, %v457_v22  ;;  %v482_v39 = vand.u32 2147483647, %v457_v22  ;;  %vm478_vm6 = vweird.f32 %v457_v22 }
 0x64e   :  { %v460_v23 = vsub.f32 1.0, %v459_v20  ;;  %783 = vpow2.f32 %v510_v46  ;;  %v512_v59 = vmul.f32 1.442695, %v509_v54  ;;  %v444_v20 = vmul.f32 0.5, %v997_v4 }
 0x64f   :  { %v485_v43 = vor.u32 1.1754944e-38, %v484_v36  ;;  %vm483_vm8 = vcmp.eq.f32.partialorder %v482_v39, 8.507059e+37 }
 0x650   :  { %v461_v0 = vmul.f32 %v780_v48, %v460_v23  ;;  %785 = vpow2.f32 %v512_v59 }
 0x652   :  { %v462_v27 = vadd.f32 %v780_v48, %v461_v0  ;;  %v752_v0 = vld [vmem:[%s1051_s7 + $0xa] ss:$0 sm:$0xff]  ;;  %s819_s7 = smov 128  }
 0x653   :  { %v782_v1 = vpop.eup %781 }
 0x654   :  { %v466_v30 = vsel %vm465_vm3, %v780_v48, %v462_v27  ;;  %v474_v31 = vmul.f32 %v782_v1, %v457_v22  ;;  %vm479_vm5 = vweird.f32 %v782_v1  ;;  %v784_v62 = vpop.eup %783  ;;  %v445_v22 = vmul.f32 0.5, %v1009_v12 }
 0x655   :  { %v471_v32 = vsel %vm468_vm4, %v470_v29, %v466_v30  ;;  %vm480_vm7 = vmor %vm478_vm6, %vm479_vm5 }
 0x656   :  { %v488_v34 = vmul.f32 1.0614054, %v471_v32  ;;  %v475_v35 = vsub.f32 1.0, %v474_v31  ;;  %v786_v9 = vpop.eup %785 }
 0x658   :  { %v490_v37 = vadd.f32 -1.4531521, %v488_v34  ;;  %v476_v38 = vmul.f32 %v782_v1, %v475_v35 }
 0x65a   :  { %v492_v41 = vmul.f32 %v490_v37, %v471_v32  ;;  %v477_v42 = vadd.f32 %v782_v1, %v476_v38 }
 0x65c   :  { %v494_v44 = vadd.f32 1.4214138, %v492_v41  ;;  %v481_v45 = vsel %vm480_vm7, %v782_v1, %v477_v42 }
 0x65d   :  { %v486_v49 = vsel %vm483_vm8, %v485_v43, %v481_v45 }
 0x65e   :  { %v496_v51 = vmul.f32 %v494_v44, %v471_v32  ;;  %v489_v52 = vmul.f32 1.0614054, %v486_v49 }
 0x660   :  { %v498_v53 = vadd.f32 -0.28449672, %v496_v51  ;;  %v491_v13 = vadd.f32 -1.4531521, %v489_v52 }
 0x662   :  { %v500_v55 = vmul.f32 %v498_v53, %v471_v32  ;;  %v493_v56 = vmul.f32 %v491_v13, %v486_v49 }
 0x664   :  { %v502_v57 = vadd.f32 0.2548296, %v500_v55  ;;  %v495_v58 = vadd.f32 1.4214138, %v493_v56 }
 0x666   :  { %v504_v60 = vmul.f32 %v502_v57, %v471_v32  ;;  %v497_v61 = vmul.f32 %v495_v58, %v486_v49 }
 0x668   :  { %v499_v63 = vadd.f32 -0.28449672, %v497_v61  ;;  %v514_v2 = vmul.f32 %v784_v62, %v504_v60 }
 0x66a   :  { %v501_v3 = vmul.f32 %v499_v63, %v486_v49  ;;  %v516_v7 = vsub.f32 1.0, %v514_v2 }
 0x66c   :  { %v503_v5 = vadd.f32 0.2548296, %v501_v3  ;;  %v518_v16 = vmul.f32 %v516_v7, %v450_v11 }
 0x66e   :  { %v505_v8 = vmul.f32 %v503_v5, %v486_v49  ;;  %v520_v50 = vadd.f32 1.0, %v518_v16 }
 0x670   :  { %v515_v14 = vmul.f32 %v786_v9, %v505_v8  ;;  %v522_v6 = vmul.f32 %v520_v50, %v444_v20 }
 0x672   :  { %v517_v17 = vsub.f32 1.0, %v515_v14 }
 0x674   :  { %v519_v48 = vmul.f32 %v517_v17, %v451_v18 }
 0x676   :  { %v521_v23 = vadd.f32 1.0, %v519_v48 }
 0x678   :  { %v523_v24 = vmul.f32 %v521_v23, %v445_v22 }
 0x67a   :  { %v524_v25 = vpack.c.bf16 %v523_v24, %v522_v6 }
 0x67c   :  { %598 = vmatmul.bf16.vlgmr.msra.gmra.mxu0 %v524_v25 }
 0x6f9   :  { %v599_v15 = vpop.f32.mrf.mxu0 }
 0x6fa   :  { %v600_v26 = vadd.f32 %v752_v0, %v599_v15 }
 0x6fc   :  { %v604_v27 = vadd.f32 %v600_v26, %v961_v19 }
 0x6fe   :  { %606 = vst.msk [vmem:[#allocation2] sm:$0xff] %vm46_vm0, %v604_v27 }
 0x701   :  { %v601_v4 = vpop.f32.mrf.mxu0 }
 0x702   :  { %v602_v12 = vadd.f32 %v752_v0, %v601_v4 }
 0x704   :  { %v605_v28 = vadd.f32 %v602_v12, %v966_v21 }
 0x706   :  { %607 = vst.msk [vmem:[#allocation2 + $0x8] sm:$0xff] %vm46_vm0, %v605_v28 }
 0x707   :  { %620 = dma.vmem_to_hbm [thread:$0]  %s613_s19, 256, %s615_s22, [#allocation3], %s819_s7, %s819_s7, %s820_s5  }
 0x708   :  { %811 = dma.done.wait [#allocation3], 256  }
 0x709   :  { %812 = vsyncadd [#allocation3], 4294967040 }
 0x70a   :  { %625 = vsyncpa [#allocation3], 1 }

</bundles_post_ra>
